<compile_context>
chip_gen: v6e
topology: v6e:2x2x1
jax: 0.10.0
libtpu: 0.0.40
codegen_flags: <defaults>
</compile_context>

<pallas_src>
import functools
import math

import jax
import jax.numpy as jnp
from jax.experimental import pallas as pl
from jax.experimental.pallas import tpu as pltpu


def _layernorm_kernel(x_ref, wb_ref, o_ref, *, eps, inv_c):
    # x_ref: (TN, C) rows to normalize; wb_ref: (2, C) resident f32 [weight; bias].
    x = x_ref[...].astype(jnp.float32)
    mean = jnp.sum(x, axis=-1, keepdims=True) * inv_c        # XLU lane-sum + one vmul
    c = x - mean
    var = jnp.sum(c * c, axis=-1, keepdims=True) * inv_c     # biased variance = mean(c^2)
    inv = jax.lax.rsqrt(var + eps)                            # EUP slot; no VPU divide
    y = c * inv * wb_ref[0:1, :] + wb_ref[1:2, :]
    o_ref[...] = y.astype(o_ref.dtype)


def _pick_block_rows(n_rows, c, itemsize, *,
                     target_bytes=4 << 20, max_bytes=6 << 20, min_steps=8):
    """Pick a fixed, sublane-aligned row-tile size.

    - Aligned to the dtype packing factor (8 rows f32, 16 bf16, 32 int8/fp8).
    - ~target_bytes per (rows, C) tile, capped at max_bytes so
      2x(in) + 2x(out) double-buffers + params stay under the 32 MiB VMEM limit.
    - When the input is large enough, keep >= min_steps grid steps so each v7x
      TensorCore sees several pipelined steps (DMA stays hidden).
    The grid uses pl.cdiv, so n_rows need NOT be a multiple of the tile size.
    """
    packing = max(8, 32 // max(1, itemsize))
    row_bytes = max(1, c * itemsize)
    tn = max(packing, target_bytes // row_bytes)
    tn = min(tn, max(packing, max_bytes // row_bytes))
    if n_rows >= min_steps * packing:
        tn = min(tn, max(packing, n_rows // min_steps))
    tn = max(packing, (tn // packing) * packing)              # sublane/packing aligned
    tn = min(tn, pl.cdiv(n_rows, packing) * packing)          # don't exceed (padded) rows
    return tn


def layernorm_general(x, weight, bias, *, eps=1e-5):
    """x: [..., C]; weight, bias: [C]. Normalizes over the last dim (normalized_dim=(-1,))."""
    orig_shape = x.shape
    C = orig_shape[-1]
    N = math.prod(orig_shape[:-1])
    x2 = x.reshape(N, C)
    # Pre-cast affine params to f32 once and stack into a single resident (2, C) input.
    wb = jnp.stack([weight.astype(jnp.float32).reshape(C),
                    bias.astype(jnp.float32).reshape(C)], axis=0)

    # TODO(synk): if C % 128 != 0, fold rows into the lane axis for lane-dense stores;
    # the kernel is still correct (C block == full array dim), just slower.
    tn = _pick_block_rows(N, C, jnp.dtype(x.dtype).itemsize)
    grid = (pl.cdiv(N, tn),)

    out = pl.pallas_call(
        functools.partial(_layernorm_kernel, eps=eps, inv_c=1.0 / C),
        out_shape=jax.ShapeDtypeStruct((N, C), x.dtype),
        grid_spec=pltpu.PrefetchScalarGridSpec(
            num_scalar_prefetch=0,
            grid=grid,
            in_specs=[
                pl.BlockSpec((tn, C), lambda i: (i, 0)),
                # Constant block index -> weight/bias stay VMEM-resident across steps.
                pl.BlockSpec((2, C), lambda i: (0, 0)),
            ],
            out_specs=pl.BlockSpec((tn, C), lambda i: (i, 0)),
        ),
        compiler_params=pltpu.CompilerParams(
            dimension_semantics=("parallel",),
            # Tiles capped at 6 MiB -> 4 buffers + params < 26 MiB; 32 MiB is safe
            # on v5e/v6e (128 MiB physical) and v7x (64 MiB physical).
            vmem_limit_bytes=32 * 1024 * 1024,
        ),
    )(x2, wb)
    return out.reshape(orig_shape)


def _reference(x, weight, bias, eps=1e-5):
    """Pure-JAX reference matching the PyTorch forward."""
    xf = x.astype(jnp.float32)
    c = xf - jnp.mean(xf, axis=-1, keepdims=True)
    s = jnp.mean(c * c, axis=-1, keepdims=True)
    y = c / jnp.sqrt(s + eps)
    y = y * weight.astype(jnp.float32) + bias.astype(jnp.float32)
    return y.astype(x.dtype)


if __name__ == "__main__":
    key = jax.random.PRNGKey(0)
    k1, k2, k3 = jax.random.split(key, 3)
    # Channels-last input as used in dfformer; C=128 keeps stores lane-dense.
    B, H, W, C = 2, 16, 16, 128
    x = jax.random.normal(k1, (B, H, W, C), dtype=jnp.float32)
    weight = 1.0 + 0.1 * jax.random.normal(k2, (C,), dtype=jnp.float32)
    bias = 0.1 * jax.random.normal(k3, (C,), dtype=jnp.float32)

    out = layernorm_general(x, weight, bias, eps=1e-5)
    out = jax.block_until_ready(out)

    ref = _reference(x, weight, bias, eps=1e-5)
    assert out.shape == x.shape
    assert jnp.allclose(out, ref, atol=1e-4, rtol=1e-4)
    print("KERNEL_OK")
</pallas_src>

<mosaic_0001>
module attributes {stable_mosaic.version = 11 : i64} {
  func.func @_layernorm_kernel(%arg0: i32, %arg1: memref<64x128xf32, #tpu.memory_space<vmem>>, %arg2: memref<2x128xf32, #tpu.memory_space<vmem>>, %arg3: memref<64x128xf32, #tpu.memory_space<vmem>>) attributes {dimension_semantics = [#tpu.dimension_semantics<parallel>], iteration_bounds = array<i64: 8>, scalar_prefetch = 0 : i64, scratch_operands = 0 : i64, tpu.core_type = #tpu.core_type<tc>, window_params = [{transform_indices = @transform_0, window_bounds = array<i64: 64, 128>}, {pipeline_mode = #tpu.pipeline_mode<synchronous>, transform_indices = @transform_1, window_bounds = array<i64: 2, 128>}, {transform_indices = @transform_2, window_bounds = array<i64: 64, 128>}]} {
    %c0 = arith.constant 0 : index
    %c0_0 = arith.constant 0 : index
    %0 = vector.load %arg1[%c0, %c0_0] : memref<64x128xf32, #tpu.memory_space<vmem>>, vector<64x128xf32>
    %cst = arith.constant dense<0.000000e+00> : vector<64xf32>
    %1 = vector.multi_reduction <add>, %0, %cst [1] : vector<64x128xf32> to vector<64xf32>
    %2 = vector.shape_cast %1 : vector<64xf32> to vector<64x1xf32>
    %cst_1 = arith.constant 7.812500e-03 : f32
    %3 = vector.broadcast %cst_1 : f32 to vector<64x1xf32>
    %4 = arith.mulf %2, %3 : vector<64x1xf32>
    %5 = vector.broadcast %4 : vector<64x1xf32> to vector<64x128xf32>
    %6 = arith.subf %0, %5 : vector<64x128xf32>
    %7 = arith.mulf %6, %6 : vector<64x128xf32>
    %cst_2 = arith.constant dense<0.000000e+00> : vector<64xf32>
    %8 = vector.multi_reduction <add>, %7, %cst_2 [1] : vector<64x128xf32> to vector<64xf32>
    %9 = vector.shape_cast %8 : vector<64xf32> to vector<64x1xf32>
    %cst_3 = arith.constant 7.812500e-03 : f32
    %10 = vector.broadcast %cst_3 : f32 to vector<64x1xf32>
    %11 = arith.mulf %9, %10 : vector<64x1xf32>
    %cst_4 = arith.constant 9.99999974E-6 : f32
    %12 = vector.broadcast %cst_4 : f32 to vector<64x1xf32>
    %13 = arith.addf %11, %12 : vector<64x1xf32>
    %14 = math.rsqrt %13 : vector<64x1xf32>
    %15 = vector.broadcast %14 : vector<64x1xf32> to vector<64x128xf32>
    %16 = arith.mulf %6, %15 : vector<64x128xf32>
    %c0_5 = arith.constant 0 : index
    %c0_6 = arith.constant 0 : index
    %17 = vector.load %arg2[%c0_5, %c0_6] : memref<2x128xf32, #tpu.memory_space<vmem>>, vector<1x128xf32>
    %18 = vector.broadcast %17 : vector<1x128xf32> to vector<64x128xf32>
    %19 = arith.mulf %16, %18 : vector<64x128xf32>
    %c1 = arith.constant 1 : index
    %c0_7 = arith.constant 0 : index
    %20 = vector.load %arg2[%c1, %c0_7] : memref<2x128xf32, #tpu.memory_space<vmem>>, vector<1x128xf32>
    %21 = vector.broadcast %20 : vector<1x128xf32> to vector<64x128xf32>
    %22 = arith.addf %19, %21 : vector<64x128xf32>
    %c0_8 = arith.constant 0 : index
    %c0_9 = arith.constant 0 : index
    %23 = vector.load %arg3[%c0_8, %c0_9] : memref<64x128xf32, #tpu.memory_space<vmem>>, vector<64x128xf32>
    tpu.vector_store %arg3[%c0_8, %c0_9], %22 {strides = array<i32>} : memref<64x128xf32, #tpu.memory_space<vmem>>, vector<64x128xf32>,
    return
  }
  func.func @transform_0(%arg0: i32) -> (i32, i32) {
    %c0_i32 = arith.constant 0 : i32
    %c0_i32_0 = arith.constant 0 : i32
    return %arg0, %c0_i32 : i32, i32
  }
  func.func @transform_1(%arg0: i32) -> (i32, i32) {
    %c0_i32 = arith.constant 0 : i32
    %c0_i32_0 = arith.constant 0 : i32
    %c0_i32_1 = arith.constant 0 : i32
    return %c0_i32, %c0_i32_0 : i32, i32
  }
  func.func @transform_2(%arg0: i32) -> (i32, i32) {
    %c0_i32 = arith.constant 0 : i32
    %c0_i32_0 = arith.constant 0 : i32
    return %arg0, %c0_i32 : i32, i32
  }
}

</mosaic_0001>

<bundles_post_ra>
// kernel: tpu_custom_call.1
= control target key start
LH: loop header
LB: loop body
LE: loop exit
PB: predicated region body
PF: predicated region fallthrough
CT: control target
= control target key end

     0   :  { %7 = vsyncpa [#allocation3], 0  ;;  %s881_s0 = inlined_call_operand.hbm [shape: f32[512,128], index: 0, kind: input, shape index: {}]   ;;  %s882_s1 = inlined_call_operand.hbm [shape: f32[2,128], index: 1, kind: input, shape index: {}]   ;;  %s883_s2 = inlined_call_operand.hbm [shape: f32[512,128], index: 2, kind: output, shape index: {}]  }
   0x1   :  { %9 = vsyncpa [#allocation3 + $0x1], 0 }
   0x2   :  { %10 = vsyncpa [#allocation6], 0 }
   0x3   :  { %11 = vsyncpa [#allocation4], 0 }
   0x4   :  { %13 = vsyncpa [#allocation4 + $0x1], 0  ;;  %s647_s9 = smov 0   ;;  %s649_s10 = smov 0  }
   0x5   :  { %s651_s11 = smov 0   ;;  %s653_s12 = smov 0  }
   0x6 LB: > { %s668_s13 = sadd.s32 4294967295, %s623_s12   ;;  %s404_s14 = sadd.s32 4294967294, %s623_s12   ;;  %s623_s12 = sphi %s653_s12, %s904_s12   ;;  %s619_s11 = sphi %s651_s11, %s903_s11   ;;  %s615_s10 = sphi %s649_s10, %s902_s10   ;;  %s611_s9 = sphi %s647_s9, %s901_s9  }
   0x7   : > { %s672_s15 = sadd.s32 1, %s623_s12   ;;  %s26_s16 = sadd.s32 1, %s619_s11 }
   0x8   : > { %s23_s17 = ssub.s32 %s623_s12, %s672_s15  ;;  %p33_p0 = scmp.ne.s32.totalorder %s619_s11, %s615_s10 }
   0x9   : > { %p24_p1 = scmp.eq.s32.totalorder %s23_s17, 0  ;;  %p34_p2 = scmp.eq.s32.totalorder %s623_s12, 0 }
   0xa   : > { %p39_p3 = scmp.ne.s32.totalorder %s615_s10, %s611_s9  ;;  %p885_p4 = scmp.eq.s32.totalorder %s668_s13, 0 }
   0xb   : > { %s684_s18 = scalar_select %p24_p1, %s619_s11, %s26_s16  }
   0xc   : > { %p686_p5 = por %p34_p2, %p33_p0  ;;  %p692_p6 = por %p885_p4, %p39_p3 }
   0xd   : > { %p84_p7 = scmp.eq.s32.totalorder %s668_s13, 7  ;;  %p90_p8 = scmp.eq.s32.totalorder %s404_s14, 7 }
   0xe   : > { %s889_s20 = scalar_select %p692_p6, 1, 0 }
   0xf   : > { %p405_p9 = scmp.ge.s32.totalorder %s623_s12, 1  ;;  %p97_p10 = scmp.lt.s32.totalorder %s623_s12, 9 }
  0x10   : > { %p699_p11 = por %p84_p7, %p33_p0  ;;  %p703_p12 = por %p90_p8, %p39_p3 }
  0x11   : > { %p707_p13 = pnand %p405_p9, %p97_p10  ;;  %s625_s24 = smov [#allocation5]  }
  0x12   : > { %s890_s21 = scalar_select %p699_p11, 1, 0 }
  0x13   : > { %s891_s22 = scalar_select %p703_p12, 1, 0 }
  0x14   : > { %s892_s23 = scalar_select %p707_p13, 1, 0 }
  0x15   : > { %p432_p1 = pneg %p707_p13  ;;  %s110_s25 = sshll.u32 %s625_s24, 4  ;;  %s111_s25 = int_to_ptr.vmem [resolvable:$true] %s110_s25 }
  0x16   : > { %p445_p2 = scmp.lt.s32.totalorder %s623_s12, 8  ;;  %s121_s27 = sand.u32 1, %s619_s11  }
  0x17   : > { %p716_p0 = pnand %p432_p1, %p885_p4  ;;  %s408_s29 = sshll.u32 %s121_s27, 6 }
  0x18   : > { %p723_p3 = pnand %p445_p2, %p686_p5  ;;  %s512_s30 = scalar_lea.vmem %s111_s25, 32 }
  0x19   : > { %p503_p7 = pneg %p716_p0  ;;  %p513_p8 = scmp.ne.s32.totalorder %s111_s25, %s512_s30 }
  0x1a   : > { %p520_p12 = scmp.lt.s32.totalorder %s111_s25, %s111_s25  ;;  %p521_p11 = scmp.lt.s32.totalorder %s512_s30, %s512_s30 }
  0x1b   : > { %p515_p9 = pnand %p513_p8, %p503_p7 }
  0x1c   : > { %p522_p1 = por %p521_p11, %p520_p12 }
  0x1d   : > { %p516_p10 = pneg %p515_p9 }
  0x1f   : > { %p523_p4 = pnand %p522_p1, %p516_p10 }
  0x21   : > { %526 = shalt.err (!%p523_p4)
}
  0x22   : > { %435 = dma.hbm_to_vmem [thread:$0]  (!%p716_p0), %s882_s1, 32, %s111_s25, [#allocation6]  }
  0x23   : > { %s422_s5 = sshll.u32 %s623_s12, 10  ;;  %s125_s6 = scalar_lea.vmem [#allocation2], %s408_s29 }
  0x24   : > { %s132_s7 = sshll.u32 %s125_s6, 4  ;;  %s738_s16 = scalar_lea.hbm %s881_s0, %s422_s5  ;;  %s740_s7 = int_to_ptr.vmem [resolvable:$true] %s132_s7 }
  0x25   : > { %s742_s17 = scalar_lea.sflag [#allocation3], %s121_s27  ;;  %s527_s19 = scalar_lea.hbm %s738_s16, 1024 }
  0x26   : > { %p528_p4 = scmp.ne.s32.totalorder %s738_s16, %s527_s19  ;;  %p529_p5 = pneg %p723_p3 }
  0x27   : > { %s532_s26 = scalar_lea.hbm %s881_s0, 8192  ;;  %p533_p2 = scmp.lt.s32.totalorder %s738_s16, %s881_s0 }
  0x28   : > { %p530_p11 = pnand %p529_p5, %p528_p4  ;;  %p534_p0 = scmp.lt.s32.totalorder %s532_s26, %s527_s19 }
  0x2a   : > { %p531_p12 = pneg %p530_p11  ;;  %p535_p7 = por %p534_p0, %p533_p2 }
  0x2c   : > { %p536_p8 = pnand %p535_p7, %p531_p12 }
  0x2e   : > { %539 = shalt.err (!%p536_p8)
}
  0x2f   : > { %s540_s27 = scalar_lea.vmem %s740_s7, 1024  ;;  %s626_s3 = smov [#allocation2]  }
  0x30   : > { %p541_p9 = scmp.ne.s32.totalorder %s740_s7, %s540_s27  ;;  %s545_s4 = sshll.u32 %s626_s3, 4  ;;  %s546_s4 = int_to_ptr.vmem [resolvable:$false] %s545_s4 }
  0x31   : > { %s547_s5 = scalar_lea.vmem %s546_s4, 2048  ;;  %p548_p4 = scmp.lt.s32.totalorder %s740_s7, %s546_s4 }
  0x32   : > { %p543_p10 = pnand %p541_p9, %p529_p5  ;;  %p549_p11 = scmp.lt.s32.totalorder %s547_s5, %s540_s27 }
  0x34   : > { %p544_p1 = pneg %p543_p10  ;;  %p550_p6 = por %p549_p11, %p548_p4 }
  0x36   : > { %p551_p13 = pnand %p550_p6, %p544_p1 }
  0x38   : > { %554 = shalt.err (!%p551_p13)
}
  0x39   : > { %s627_s6 = smov 128   ;;  %s628_s8 = smov 8  }
  0x3a   : > { %439 = dma.hbm_to_vmem [thread:$0]  (!%p723_p3), %s738_s16, 1024, %s740_s7, %s742_s17, %s627_s6, %s627_s6, %s628_s8  }
  0x3b   : > { %p895_p5 = scmp.ne.s32.totalorder %s892_s23, 0 }
  0x3c   : > { %s766_s14 = sand.u32 (!%p895_p5), 1, %s615_s10   ;;  %p896_p6 = scmp.ne.s32.totalorder (!%p895_p5), %s889_s20, 0 }
  0x3d   : > { %144 = sbr.rel (%p895_p5) target bundleno = 407 (0x197), region = 28  ;;  %s412_s19 = sshll.u32 (!%p895_p5), %s766_s14, 6 }
  0x3e   : > { %s147_s24 = scalar_lea.sflag (!%p895_p5), [#allocation3], %s766_s14  ;;  %s150_s25 = scalar_lea.vmem (!%p895_p5), [#allocation2], %s412_s19 }
  0x42   : > { %598 = dma.done.wait (%p896_p6), %s147_s24, 1024  }
  0x43   : > { %600 = vsyncadd (%p896_p6), %s147_s24, 4294966272  ;;  %p897_p13 = scmp.eq.s32.totalorder %s668_s13, 0 }
  0x45   : > { %602 = dma.done.wait (%p897_p13), [#allocation6], 32   ;;  %p898_p3 = pmov %p897_p13 }
  0x46   : > { %v177_v0 = vld [vmem:[%s150_s25] sm:$0xff]  ;;  %v179_v1 = vld [vmem:[%s150_s25 + $0x10] sm:$0xff]  ;;  %v178_v2 = vld [vmem:[%s150_s25 + $0x8] sm:$0xff]  ;;  %s817_s20 = scalar_lea.vmem [#allocation7], %s412_s19  ;;  %s423_s23 = sshll.u32 %s668_s13, 10 }
  0x47   : > { %604 = vsyncadd (%p898_p3), [#allocation6], 4294967264  ;;  %185 = vadd.xlane.f32.xlu0 %v177_v0  ;;  %189 = vadd.xlane.f32.xlu1 %v179_v1  ;;  %v180_v3 = vld [vmem:[%s150_s25 + $0x18] sm:$0xff]  ;;  %v181_v4 = vld [vmem:[%s150_s25 + $0x20] sm:$0xff]  ;;  %s321_s28 = sshll.u32 %s817_s20, 4  ;;  %s836_s17 = scalar_lea.hbm %s883_s2, %s423_s23  ;;  %s838_s28 = int_to_ptr.vmem [resolvable:$true] %s321_s28 }
  0x48   : > { %v182_v5 = vld [vmem:[%s150_s25 + $0x28] sm:$0xff]  ;;  %v183_v6 = vld [vmem:[%s150_s25 + $0x30] sm:$0xff]  ;;  %v184_v7 = vld [vmem:[%s150_s25 + $0x38] sm:$0xff]  ;;  %s308_s26 = scalar_lea.sflag [#allocation4], %s766_s14  ;;  %s555_s29 = scalar_lea.vmem %s838_s28, 1024 }
  0x49   : > { %p556_p12 = scmp.ne.s32.totalorder %s838_s28, %s555_s29  ;;  %p899_p2 = scmp.ne.s32.totalorder %s890_s21, 0 }
  0x4a   : > { %s629_s13 = smov [#allocation7]  }
  0x4b   : > { %187 = vadd.xlane.f32.xlu0 %v178_v2  ;;  %191 = vadd.xlane.f32.xlu1 %v180_v3  ;;  %p557_p0 = pnand %p556_p12, %p899_p2  ;;  %s559_s30 = sshll.u32 %s629_s13, 4  ;;  %s560_s30 = int_to_ptr.vmem [resolvable:$false] %s559_s30 }
  0x4c   : > { %s561_s27 = scalar_lea.vmem %s560_s30, 2048  ;;  %p562_p8 = scmp.lt.s32.totalorder %s838_s28, %s560_s30 }
  0x4d   : > { %p558_p7 = pneg %p557_p0  ;;  %p563_p9 = scmp.lt.s32.totalorder %s561_s27, %s555_s29 }
  0x4f   : > { %193 = vadd.xlane.f32.xlu0 %v181_v4  ;;  %195 = vadd.xlane.f32.xlu1 %v182_v5  ;;  %p564_p10 = por %p563_p9, %p562_p8 }
  0x51   : > { %p565_p1 = pnand %p564_p10, %p558_p7 }
  0x53   : > { %197 = vadd.xlane.f32.xlu0 %v183_v6  ;;  %199 = vadd.xlane.f32.xlu1 %v184_v7 }
  0xd0   : > { %v186_v8 = vpop.xlane.xlu0 %185  ;;  %v190_v9 = vpop.xlane.xlu1 %189 }
  0xd1   : > { %v201_v10 = vmul.f32 0.0078125, %v186_v8  ;;  %v203_v11 = vmul.f32 0.0078125, %v190_v9 }
  0xd3   : > { %v780_v12 = vsub.f32 %v177_v0, %v201_v10  ;;  %v782_v13 = vsub.f32 %v179_v1, %v203_v11  ;;  %v415_v0 = vld [vmem:[#allocation5] ss:$0 sm:$0xff] }
  0xd4   : > { %v188_v14 = vpop.xlane.xlu0 %187  ;;  %v192_v15 = vpop.xlane.xlu1 %191 }
  0xd5   : > { %v202_v16 = vmul.f32 0.0078125, %v188_v14  ;;  %v217_v17 = vmul.f32 %v780_v12, %v780_v12  ;;  %v204_v18 = vmul.f32 0.0078125, %v192_v15  ;;  %v219_v21 = vmul.f32 %v782_v13, %v782_v13 }
  0xd7   : > { %v786_v19 = vsub.f32 %v178_v2, %v202_v16  ;;  %225 = vadd.xlane.f32.xlu0 %v217_v17  ;;  %v788_v20 = vsub.f32 %v180_v3, %v204_v18  ;;  %v416_v3 = vld [vmem:[#allocation5 + $0x1] ss:$0 sm:$0xff] }
  0xd8   : > { %v194_v22 = vpop.xlane.xlu0 %193  ;;  %v196_v23 = vpop.xlane.xlu1 %195 }
  0xd9   : > { %v205_v24 = vmul.f32 0.0078125, %v194_v22  ;;  %v218_v25 = vmul.f32 %v786_v19, %v786_v19  ;;  %v206_v26 = vmul.f32 0.0078125, %v196_v23  ;;  %v220_v29 = vmul.f32 %v788_v20, %v788_v20 }
  0xdb   : > { %v794_v27 = vsub.f32 %v181_v4, %v205_v24  ;;  %229 = vadd.xlane.f32.xlu0 %v219_v21  ;;  %227 = vadd.xlane.f32.xlu1 %v218_v25  ;;  %v796_v28 = vsub.f32 %v182_v5, %v206_v26 }
  0xdc   : > { %v198_v30 = vpop.xlane.xlu0 %197  ;;  %v200_v31 = vpop.xlane.xlu1 %199 }
  0xdd   : > { %v207_v32 = vmul.f32 0.0078125, %v198_v30  ;;  %v221_v33 = vmul.f32 %v794_v27, %v794_v27  ;;  %v208_v34 = vmul.f32 0.0078125, %v200_v31  ;;  %v222_v37 = vmul.f32 %v796_v28, %v796_v28 }
  0xdf   : > { %v802_v35 = vsub.f32 %v183_v6, %v207_v32  ;;  %231 = vadd.xlane.f32.xlu1 %v220_v29  ;;  %233 = vadd.xlane.f32.xlu0 %v221_v33  ;;  %v804_v36 = vsub.f32 %v184_v7, %v208_v34 }
  0xe1   : > { %v223_v38 = vmul.f32 %v802_v35, %v802_v35  ;;  %v224_v39 = vmul.f32 %v804_v36, %v804_v36 }
  0xe3   : > { %235 = vadd.xlane.f32.xlu1 %v222_v37  ;;  %237 = vadd.xlane.f32.xlu0 %v223_v38 }
  0xe7   : > { %239 = vadd.xlane.f32.xlu1 %v224_v39 }
 0x160   : > { %v226_v40 = vpop.xlane.xlu0 %225 }
 0x161   : > { %v241_v41 = vmul.f32 0.0078125, %v226_v40 }
 0x163   : > { %v249_v42 = vadd.f32 1e-05, %v241_v41 }
 0x164   : > { %v228_v43 = vpop.xlane.xlu1 %227  ;;  %v230_v44 = vpop.xlane.xlu0 %229 }
 0x165   : > { %485 = vrsqrt.f32 %v249_v42  ;;  %v242_v45 = vmul.f32 0.0078125, %v228_v43  ;;  %v243_v46 = vmul.f32 0.0078125, %v230_v44 }
 0x167   : > { %v250_v47 = vadd.f32 1e-05, %v242_v45  ;;  %v251_v48 = vadd.f32 1e-05, %v243_v46 }
 0x168   : > { %v232_v49 = vpop.xlane.xlu1 %231  ;;  %v234_v50 = vpop.xlane.xlu0 %233 }
 0x169   : > { %487 = vrsqrt.f32 %v250_v47  ;;  %v244_v51 = vmul.f32 0.0078125, %v232_v49  ;;  %v245_v52 = vmul.f32 0.0078125, %v234_v50 }
 0x16a   : > { %489 = vrsqrt.f32 %v251_v48 }
 0x16b   : > { %v252_v53 = vadd.f32 1e-05, %v244_v51  ;;  %v253_v54 = vadd.f32 1e-05, %v245_v52 }
 0x16c   : > { %v236_v55 = vpop.xlane.xlu1 %235  ;;  %v238_v56 = vpop.xlane.xlu0 %237 }
 0x16d   : > { %491 = vrsqrt.f32 %v252_v53  ;;  %v246_v57 = vmul.f32 0.0078125, %v236_v55  ;;  %v247_v58 = vmul.f32 0.0078125, %v238_v56 }
 0x16e   : > { %493 = vrsqrt.f32 %v253_v54 }
 0x16f   : > { %v254_v59 = vadd.f32 1e-05, %v246_v57  ;;  %v255_v60 = vadd.f32 1e-05, %v247_v58 }
 0x170   : > { %v240_v61 = vpop.xlane.xlu1 %239 }
 0x171   : > { %495 = vrsqrt.f32 %v254_v59  ;;  %v248_v62 = vmul.f32 0.0078125, %v240_v61 }
 0x172   : > { %v486_v63 = vpop.eup %485  ;;  %497 = vrsqrt.f32 %v255_v60 }
 0x173   : > { %v265_v1 = vmul.f32 %v486_v63, %v780_v12  ;;  %v256_v2 = vadd.f32 1e-05, %v248_v62 }
 0x175   : > { %v278_v4 = vmul.f32 %v415_v0, %v265_v1  ;;  %499 = vrsqrt.f32 %v256_v2 }
 0x176   : > { %v488_v5 = vpop.eup %487 }
 0x177   : > { %v490_v6 = vpop.eup %489  ;;  %v291_v7 = vadd.f32 %v416_v3, %v278_v4  ;;  %v266_v8 = vmul.f32 %v488_v5, %v786_v19 }
 0x178   : > { %v267_v9 = vmul.f32 %v490_v6, %v782_v13 }
 0x179   : > { %299 = vst [vmem:[%s817_s20] sm:$0xff] %v291_v7  ;;  %v279_v10 = vmul.f32 %v415_v0, %v266_v8 }
 0x17a   : > { %v492_v11 = vpop.eup %491  ;;  %v280_v12 = vmul.f32 %v415_v0, %v267_v9 }
 0x17b   : > { %v494_v14 = vpop.eup %493  ;;  %v292_v15 = vadd.f32 %v416_v3, %v279_v10  ;;  %v268_v16 = vmul.f32 %v492_v11, %v788_v20 }
 0x17c   : > { %v293_v17 = vadd.f32 %v416_v3, %v280_v12  ;;  %v269_v18 = vmul.f32 %v494_v14, %v794_v27 }
 0x17d   : > { %300 = vst [vmem:[%s817_s20 + $0x8] sm:$0xff] %v292_v15  ;;  %v281_v13 = vmul.f32 %v415_v0, %v268_v16 }
 0x17e   : > { %v496_v19 = vpop.eup %495  ;;  %301 = vst [vmem:[%s817_s20 + $0x10] sm:$0xff] %v293_v17  ;;  %v282_v21 = vmul.f32 %v415_v0, %v269_v18 }
 0x17f   : > { %v498_v22 = vpop.eup %497  ;;  %v294_v23 = vadd.f32 %v416_v3, %v281_v13  ;;  %v270_v24 = vmul.f32 %v496_v19, %v796_v28 }
 0x180   : > { %v295_v25 = vadd.f32 %v416_v3, %v282_v21  ;;  %v271_v20 = vmul.f32 %v498_v22, %v802_v35 }
 0x181   : > { %302 = vst [vmem:[%s817_s20 + $0x18] sm:$0xff] %v294_v23  ;;  %v283_v26 = vmul.f32 %v415_v0, %v270_v24 }
 0x182   : > { %v500_v27 = vpop.eup %499  ;;  %303 = vst [vmem:[%s817_s20 + $0x20] sm:$0xff] %v295_v25  ;;  %v284_v29 = vmul.f32 %v415_v0, %v271_v20 }
 0x183   : > { %v296_v30 = vadd.f32 %v416_v3, %v283_v26  ;;  %v272_v31 = vmul.f32 %v500_v27, %v804_v36 }
 0x184   : > { %v297_v32 = vadd.f32 %v416_v3, %v284_v29 }
 0x185   : > { %304 = vst [vmem:[%s817_s20 + $0x28] sm:$0xff] %v296_v30  ;;  %v285_v33 = vmul.f32 %v415_v0, %v272_v31 }
 0x186   : > { %305 = vst [vmem:[%s817_s20 + $0x30] sm:$0xff] %v297_v32 }
 0x187   : > { %v298_v28 = vadd.f32 %v416_v3, %v285_v33 }
 0x189   : > { %306 = vst [vmem:[%s817_s20 + $0x38] sm:$0xff] %v298_v28 }
 0x18a   : > { %568 = shalt.err (!%p565_p1)
}
 0x18b   : > { %s569_s3 = scalar_lea.hbm %s836_s17, 1024  ;;  %s573_s6 = scalar_lea.hbm %s883_s2, 8192 }
 0x18c   : > { %p570_p4 = scmp.ne.s32.totalorder %s836_s17, %s569_s3  ;;  %p574_p6 = scmp.lt.s32.totalorder %s836_s17, %s883_s2 }
 0x18d   : > { %p575_p13 = scmp.lt.s32.totalorder %s573_s6, %s569_s3 }
 0x18e   : > { %p571_p11 = pnand %p570_p4, %p899_p2 }
 0x18f   : > { %p576_p3 = por %p575_p13, %p574_p6 }
 0x190   : > { %p572_p5 = pneg %p571_p11 }
 0x192   : > { %p577_p12 = pnand %p576_p3, %p572_p5 }
 0x194   : > { %580 = shalt.err (!%p577_p12)
}
 0x195   : > { %s630_s24 = smov 128   ;;  %s631_s25 = smov 8  }
 0x196   : > { %430 = dma.vmem_to_hbm [thread:$0]  (%p899_p2), %s838_s28, 1024, %s836_s17, %s308_s26, %s630_s24, %s630_s24, %s631_s25  }
 0x197 PF: > { %p447_p0 = scmp.ge.s32.totalorder %s623_s12, 2  ;;  %s336_s20 = sand.u32 1, %s611_s9  }
 0x198   : > { %p900_p7 = scmp.ne.s32.totalorder %s891_s22, 0  ;;  %s337_s23 = scalar_lea.sflag [#allocation4], %s336_s20 }
 0x19a   : > { %p441_p8 = pnand %p447_p0, %p900_p7 }
 0x19c   : > { %p442_p9 = pneg %p441_p8 }
 0x19e   : > { %606 = dma.done.wait (%p442_p9), %s337_s23, 1024  }
 0x19f   : > { %608 = vsyncadd (%p442_p9), %s337_s23, 4294966272  ;;  %p16_p10 = scmp.ge.s32.totalorder %s672_s15, 10   ;;  %s901_s9 = smov %s615_s10 }
 0x1a0   : > { %s902_s10 = smov %s619_s11  ;;  %s903_s11 = smov %s684_s18 }
 0x1a1   : > { %s904_s12 = smov %s672_s15  ;;  %18 = sbr.rel (!%p16_p10) target bundleno = 6 (0x6), region = 77 }
 0x1a6   :  { %342 = vsyncpa [#allocation3], 1 }
 0x1a7   :  { %344 = vsyncpa [#allocation3 + $0x1], 1 }
 0x1a8   :  { %345 = vsyncpa [#allocation6], 1 }
 0x1a9   :  { %346 = vsyncpa [#allocation4], 1 }
 0x1aa   :  { %348 = vsyncpa [#allocation4 + $0x1], 1 }

</bundles_post_ra>
